<compile_context>
chip_gen: v7x
topology: tpu7x:2x2x1
jax: 0.10.0
libtpu: 0.0.40
codegen_flags: <defaults>
</compile_context>

<pallas_src>
import jax
import jax.numpy as jnp
from jax.experimental import pallas as pl
from jax.experimental.pallas import tpu as pltpu


def _round_up(a: int, m: int) -> int:
    return (a + m - 1) // m * m


def pool_avg_kernel(x_ref, n_ref, inv_n_ref, w_ref, b_ref, o_ref, acc_ref):
    t = pl.program_id(1)

    @pl.when(t == 0)
    def _init():
        acc_ref[...] = jnp.zeros_like(acc_ref)

    x = x_ref[...].astype(jnp.float32)                       # (TB, TT, D)
    tb, tt, _ = x.shape
    # Global time index of every row in this tile (int32, lane-thin (TB, TT, 1)).
    t_idx = t * tt + jax.lax.broadcasted_iota(jnp.int32, (tb, tt, 1), 1)
    mask = t_idx < n_ref[...][:, :, None]                    # (TB, TT, 1) bool
    # where (not *): exact zeros + discards garbage from ragged edge blocks.
    acc_ref[...] += jnp.sum(jnp.where(mask, x, 0.0), axis=1)  # (TB, D) partial sum

    @pl.when(t == pl.num_programs(1) - 1)
    def _finalize():
        pooled = acc_ref[...] * inv_n_ref[...]               # (TB, D) * (TB, 1)
        out = jnp.dot(pooled, w_ref[...], preferred_element_type=jnp.float32)
        o_ref[...] = (out + b_ref[...]).astype(o_ref.dtype)


def pool_avg(x, n_wins, weight, bias):
    """x: (B, T, D); n_wins: (B,); weight: (O, D); bias: (O,). Returns (B, O) f32."""
    B, T, D = x.shape
    O = weight.shape[0]
    O_pad = _round_up(O, 128)                    # lane-dense output / weight columns
    x_bytes = jnp.dtype(x.dtype).itemsize

    # ---- per-generation VMEM budget -------------------------------------
    vmem_budget = 48 * 1024 * 1024               # safe under v7x's 64 MiB / TC
    try:
        phys = int(pltpu.get_tpu_info().vmem_capacity_bytes)
        if phys >= 96 * 1024 * 1024:             # v5e / v6e: 128 MiB physical
            vmem_budget = 100 * 1024 * 1024
    except Exception:
        pass

    # ---- batch tile: sublane-dense; >= 2 grid steps when B > 8 (v7x) ----
    if B <= 8:
        TB = B                                   # block equals full batch dim
    else:
        TB = max(8, min(128, _round_up(pl.cdiv(B, 2), 8)))

    def working_set(tb, tt):
        return (2 * tb * tt * D * x_bytes        # x tile, double-buffered
                + 2 * D * O_pad * 4              # weight buffers
                + 2 * 8 * O_pad * 4              # bias buffers (sublane-padded)
                + 2 * tb * O_pad * 4             # output buffers
                + tb * D * 4                     # f32 accumulator scratch
                + 4 * tb * 128 * 4               # n, 1/n (lane-padded), 2 bufs each
                + (1 << 20))                     # misc slack (semaphores etc.)

    while TB > 8 and working_set(TB, 8) > vmem_budget:
        TB = max(8, _round_up(TB // 2, 8))

    # ---- time tile: as large as the VMEM budget allows ------------------
    avail = vmem_budget - working_set(TB, 0)
    tt_cap = max(8, (avail // (2 * TB * D * x_bytes)) // 8 * 8)
    TT = int(max(8, min(tt_cap, _round_up(T, 8))))

    grid_b = int(pl.cdiv(B, TB))
    grid_t = int(pl.cdiv(T, TT))
    B_out = grid_b * TB                          # only the OUTPUT is padded

    # ---- tiny padded operands (n padded with 0 -> ragged batch rows masked) ----
    n_f = n_wins.astype(jnp.float32)
    n_i = jnp.zeros((B_out, 1), jnp.int32).at[:B, 0].set(n_f.astype(jnp.int32))
    inv_n = jnp.ones((B_out, 1), jnp.float32).at[:B, 0].set(1.0 / n_f)
    w_p = jnp.zeros((D, O_pad), jnp.float32).at[:, :O].set(weight.T.astype(jnp.float32))
    b_p = jnp.zeros((1, O_pad), jnp.float32).at[0, :O].set(bias.astype(jnp.float32))

    vmem_limit = int(min(working_set(TB, TT) + (4 << 20), 112 * 1024 * 1024))

    cost = pl.CostEstimate(
        flops=2 * B * T * D + 2 * B_out * D * O_pad,
        transcendentals=0,
        bytes_accessed=x.size * x_bytes + D * O_pad * 4 + B_out * O_pad * 4,
    )

    out = pl.pallas_call(
        pool_avg_kernel,
        out_shape=jax.ShapeDtypeStruct((B_out, O_pad), jnp.float32),
        grid=(grid_b, grid_t),
        in_specs=[
            pl.BlockSpec((TB, TT, D), lambda b, t: (b, t, 0)),  # x: streamed, unpadded
            pl.BlockSpec((TB, 1), lambda b, t: (b, 0)),         # n_wins (int32), per b-tile
            pl.BlockSpec((TB, 1), lambda b, t: (b, 0)),         # 1 / n_wins
            pl.BlockSpec((D, O_pad), lambda b, t: (0, 0)),      # weight (resident)
            pl.BlockSpec((1, O_pad), lambda b, t: (0, 0)),      # bias   (resident)
        ],
        out_specs=pl.BlockSpec((TB, O_pad), lambda b, t: (b, 0)),
        scratch_shapes=[pltpu.VMEM((TB, D), jnp.float32)],
        compiler_params=pltpu.CompilerParams(
            dimension_semantics=("parallel", "arbitrary"),
            vmem_limit_bytes=vmem_limit,
        ),
        cost_estimate=cost,
    )(x, n_i, inv_n, w_p, b_p)

    return out[:B, :O]


def pool_avg_ref(x, n_wins, weight, bias):
    B, T, D = x.shape
    mask = jnp.arange(T)[None, :] < n_wins.astype(jnp.int32)[:, None]   # (B, T)
    xm = jnp.where(mask[:, :, None], x, 0.0)
    pooled = xm.sum(axis=1) / n_wins[:, None]
    return jnp.dot(pooled, weight.T, precision=jax.lax.Precision.HIGHEST) + bias


if __name__ == "__main__":
    B, T, D, O = 2, 8, 32, 16

    key = jax.random.PRNGKey(0)
    kx, kw, kb = jax.random.split(key, 3)

    x = jax.random.normal(kx, (B, T, D), dtype=jnp.float32)
    n_wins = jnp.array([5.0, 8.0], dtype=jnp.float32)        # valid time-steps per batch

    # Linear(d_input=D, output_size=O) params in PyTorch layout: (O, D), (O,)
    weight = jax.random.normal(kw, (O, D), dtype=jnp.float32) * (1.0 / jnp.sqrt(D))
    bias = jax.random.normal(kb, (O,), dtype=jnp.float32) * 0.01

    out = pool_avg(x, n_wins, weight, bias)
    out = jax.block_until_ready(out)

    ref = pool_avg_ref(x, n_wins, weight, bias)
    assert out.shape == (B, O)
    assert jnp.allclose(out, ref, atol=1e-4, rtol=1e-4)

    print("KERNEL_OK")
</pallas_src>

<mosaic_0001>
module attributes {stable_mosaic.version = 11 : i64} {
  func.func @pool_avg_kernel(%arg0: i32, %arg1: i32, %arg2: memref<2x8x32xf32, #tpu.memory_space<vmem>>, %arg3: memref<2x1xi32, #tpu.memory_space<vmem>>, %arg4: memref<2x1xf32, #tpu.memory_space<vmem>>, %arg5: memref<32x128xf32, #tpu.memory_space<vmem>>, %arg6: memref<1x128xf32, #tpu.memory_space<vmem>>, %arg7: memref<2x128xf32, #tpu.memory_space<vmem>>, %arg8: memref<2x32xf32, #tpu.memory_space<vmem>>) attributes {dimension_semantics = [#tpu.dimension_semantics<parallel>, #tpu.dimension_semantics<arbitrary>], iteration_bounds = array<i64: 1, 1>, scalar_prefetch = 0 : i64, scratch_operands = 1 : i64, tpu.core_type = #tpu.core_type<tc>, window_params = [{transform_indices = @transform_0, window_bounds = array<i64: 2, 8, 32>}, {transform_indices = @transform_1, window_bounds = array<i64: 2, 1>}, {transform_indices = @transform_2, window_bounds = array<i64: 2, 1>}, {pipeline_mode = #tpu.pipeline_mode<synchronous>, transform_indices = @transform_3, window_bounds = array<i64: 32, 128>}, {pipeline_mode = #tpu.pipeline_mode<synchronous>, transform_indices = @transform_4, window_bounds = array<i64: 1, 128>}, {transform_indices = @transform_5, window_bounds = array<i64: 2, 128>}]} {
    %c0_i32 = arith.constant 0 : i32
    %0 = arith.cmpi eq, %arg1, %c0_i32 : i32
    %1 = arith.extui %0 : i1 to i32
    %c0_i32_0 = arith.constant 0 : i32
    %2 = arith.cmpi ne, %1, %c0_i32_0 : i32
    scf.if %2 {
      %cst_12 = arith.constant 0.000000e+00 : f32
      %23 = vector.broadcast %cst_12 : f32 to vector<2x32xf32>
      %c0_13 = arith.constant 0 : index
      %c0_14 = arith.constant 0 : index
      %24 = vector.load %arg8[%c0_13, %c0_14] : memref<2x32xf32, #tpu.memory_space<vmem>>, vector<2x32xf32>
      tpu.vector_store %arg8[%c0_13, %c0_14], %23 {strides = array<i32>} : memref<2x32xf32, #tpu.memory_space<vmem>>, vector<2x32xf32>,
    } else {
    }
    %c0 = arith.constant 0 : index
    %c0_1 = arith.constant 0 : index
    %c0_2 = arith.constant 0 : index
    %3 = vector.load %arg2[%c0, %c0_1, %c0_2] : memref<2x8x32xf32, #tpu.memory_space<vmem>>, vector<2x8x32xf32>
    %c8_i32 = arith.constant 8 : i32
    %4 = arith.muli %arg1, %c8_i32 : i32
    %5 = tpu.iota {dimensions = array<i32: 1>} : vector<2x8x1xi32>
    %6 = vector.broadcast %4 : i32 to vector<2x8x1xi32>
    %7 = arith.addi %6, %5 : vector<2x8x1xi32>
    %c0_3 = arith.constant 0 : index
    %c0_4 = arith.constant 0 : index
    %8 = vector.load %arg3[%c0_3, %c0_4] : memref<2x1xi32, #tpu.memory_space<vmem>>, vector<2x1xi32>
    %9 = vector.shape_cast %8 : vector<2x1xi32> to vector<2x1x1xi32>
    %10 = vector.broadcast %9 : vector<2x1x1xi32> to vector<2x8x1xi32>
    %11 = arith.cmpi slt, %7, %10 : vector<2x8x1xi32>
    %c0_5 = arith.constant 0 : index
    %c0_6 = arith.constant 0 : index
    %12 = vector.load %arg8[%c0_5, %c0_6] : memref<2x32xf32, #tpu.memory_space<vmem>>, vector<2x32xf32>
    %cst = arith.constant 0.000000e+00 : f32
    %13 = vector.shape_cast %11 : vector<2x8x1xi1> to vector<2x8x1xi1>
    %14 = vector.broadcast %13 : vector<2x8x1xi1> to vector<2x8x32xi1>
    %15 = vector.broadcast %cst : f32 to vector<2x8x32xf32>
    %16 = arith.select %14, %3, %15 : vector<2x8x32xi1>, vector<2x8x32xf32>
    %cst_7 = arith.constant dense<0.000000e+00> : vector<2x32xf32>
    %17 = vector.multi_reduction <add>, %16, %cst_7 [1] : vector<2x8x32xf32> to vector<2x32xf32>
    %18 = arith.addf %12, %17 : vector<2x32xf32>
    %c0_8 = arith.constant 0 : index
    %c0_9 = arith.constant 0 : index
    %19 = vector.load %arg8[%c0_8, %c0_9] : memref<2x32xf32, #tpu.memory_space<vmem>>, vector<2x32xf32>
    tpu.vector_store %arg8[%c0_8, %c0_9], %18 {strides = array<i32>} : memref<2x32xf32, #tpu.memory_space<vmem>>, vector<2x32xf32>,
    %c0_i32_10 = arith.constant 0 : i32
    %20 = arith.cmpi eq, %arg1, %c0_i32_10 : i32
    %21 = arith.extui %20 : i1 to i32
    %c0_i32_11 = arith.constant 0 : i32
    %22 = arith.cmpi ne, %21, %c0_i32_11 : i32
    scf.if %22 {
      %c0_12 = arith.constant 0 : index
      %c0_13 = arith.constant 0 : index
      %23 = vector.load %arg8[%c0_12, %c0_13] : memref<2x32xf32, #tpu.memory_space<vmem>>, vector<2x32xf32>
      %c0_14 = arith.constant 0 : index
      %c0_15 = arith.constant 0 : index
      %24 = vector.load %arg4[%c0_14, %c0_15] : memref<2x1xf32, #tpu.memory_space<vmem>>, vector<2x1xf32>
      %25 = vector.broadcast %24 : vector<2x1xf32> to vector<2x32xf32>
      %26 = arith.mulf %23, %25 : vector<2x32xf32>
      %c0_16 = arith.constant 0 : index
      %c0_17 = arith.constant 0 : index
      %27 = vector.load %arg5[%c0_16, %c0_17] : memref<32x128xf32, #tpu.memory_space<vmem>>, vector<32x128xf32>
      %cst_18 = arith.constant dense<0.000000e+00> : vector<2x128xf32>
      %28 = tpu.matmul %26, %27, %cst_18 {dimension_numbers = #tpu.dot_dimension_numbers<[1], [0], [0], [1], [0, 0, 1, 1], [], []>} : vector<2x32xf32>, vector<32x128xf32>, vector<2x128xf32> -> vector<2x128xf32>
      %c0_19 = arith.constant 0 : index
      %c0_20 = arith.constant 0 : index
      %29 = vector.load %arg6[%c0_19, %c0_20] : memref<1x128xf32, #tpu.memory_space<vmem>>, vector<1x128xf32>
      %30 = vector.broadcast %29 : vector<1x128xf32> to vector<2x128xf32>
      %31 = arith.addf %28, %30 : vector<2x128xf32>
      %c0_21 = arith.constant 0 : index
      %c0_22 = arith.constant 0 : index
      %32 = vector.load %arg7[%c0_21, %c0_22] : memref<2x128xf32, #tpu.memory_space<vmem>>, vector<2x128xf32>
      tpu.vector_store %arg7[%c0_21, %c0_22], %31 {strides = array<i32>} : memref<2x128xf32, #tpu.memory_space<vmem>>, vector<2x128xf32>,
    } else {
    }
    return
  }
  func.func @transform_0(%arg0: i32, %arg1: i32) -> (i32, i32, i32) {
    %c0_i32 = arith.constant 0 : i32
    %c0_i32_0 = arith.constant 0 : i32
    return %arg0, %arg1, %c0_i32 : i32, i32, i32
  }
  func.func @transform_1(%arg0: i32, %arg1: i32) -> (i32, i32) {
    %c0_i32 = arith.constant 0 : i32
    %c0_i32_0 = arith.constant 0 : i32
    return %arg0, %c0_i32 : i32, i32
  }
  func.func @transform_2(%arg0: i32, %arg1: i32) -> (i32, i32) {
    %c0_i32 = arith.constant 0 : i32
    %c0_i32_0 = arith.constant 0 : i32
    return %arg0, %c0_i32 : i32, i32
  }
  func.func @transform_3(%arg0: i32, %arg1: i32) -> (i32, i32) {
    %c0_i32 = arith.constant 0 : i32
    %c0_i32_0 = arith.constant 0 : i32
    %c0_i32_1 = arith.constant 0 : i32
    return %c0_i32, %c0_i32_0 : i32, i32
  }
  func.func @transform_4(%arg0: i32, %arg1: i32) -> (i32, i32) {
    %c0_i32 = arith.constant 0 : i32
    %c0_i32_0 = arith.constant 0 : i32
    %c0_i32_1 = arith.constant 0 : i32
    return %c0_i32, %c0_i32_0 : i32, i32
  }
  func.func @transform_5(%arg0: i32, %arg1: i32) -> (i32, i32) {
    %c0_i32 = arith.constant 0 : i32
    %c0_i32_0 = arith.constant 0 : i32
    return %arg0, %c0_i32 : i32, i32
  }
}

</mosaic_0001>

<bundles_post_ra>
// kernel: tpu_custom_call.1
= control target key start
LH: loop header
LB: loop body
LE: loop exit
PB: predicated region body
PF: predicated region fallthrough
CT: control target
= control target key end

     0   :  { %10 = vsyncpa [#allocation4], 0  ;;  %s442_s0 = inlined_call_operand.hbm [shape: f32[2,8,32], index: 0, kind: input, shape index: {}]   ;;  %s443_s1 = inlined_call_operand.vmem [shape: s32[2,1], index: 1, kind: input, shape index: {}]   ;;  %s444_s2 = inlined_call_operand.vmem [shape: f32[2,1], index: 2, kind: input, shape index: {}]   ;;  %s445_s3 = inlined_call_operand.hbm [shape: f32[32,128], index: 3, kind: input, shape index: {}]   ;;  %s446_s4 = inlined_call_operand.vmem [shape: f32[1,128], index: 4, kind: input, shape index: {}]   ;;  %s447_s5 = inlined_call_operand.hbm [shape: f32[2,128], index: 5, kind: output, shape index: {}]  }
   0x1   :  { %11 = vsyncpa [#allocation7], 0 }
   0x2   :  { %12 = vsyncpa [#allocation5], 0  ;;  %s352_s18 = smov [#allocation3]   ;;  %s280_s22 = scalar_lea.hbm %s442_s0, 256 }
   0x3   :  { %s18_s19 = sshll.u32 %s352_s18, 4  ;;  %p281_p0 = scmp.ne.s32.totalorder %s442_s0, %s280_s22  ;;  %s19_s19 = int_to_ptr.vmem [resolvable:$true] %s18_s19 }
   0x4   :  { %p284_p1 = scmp.lt.u32.totalorder %s280_s22, %s442_s0 }
   0x6   :  { %p286_p2 = pnand %p284_p1, %p281_p0 }
   0x8   :  { %289 = shalt.err (!%p286_p2)
}
   0x9   :  { %s290_s27 = scalar_lea.vmem %s19_s19, 256  ;;  %p295_p4 = scmp.lt.s32.totalorder %s19_s19, %s19_s19 }
   0xa   :  { %p291_p3 = scmp.ne.s32.totalorder %s19_s19, %s290_s27  ;;  %p296_p5 = scmp.lt.s32.totalorder %s290_s27, %s290_s27 }
   0xc   :  { %p297_p6 = por %p296_p5, %p295_p4 }
   0xe   :  { %p298_p7 = pnand %p297_p6, %p291_p3 }
  0x10   :  { %301 = shalt.err (!%p298_p7)
}
  0x11   :  { %s353_s28 = smov 128   ;;  %s354_s29 = smov 8  }
  0x12   :  { %24 = dma.hbm_to_vmem [thread:$0]  %s442_s0, 256, %s19_s19, [#allocation4], %s353_s28, %s353_s28, %s354_s29  }
  0x13   :  { %s355_s7 = smov [#allocation6]   ;;  %s302_s11 = scalar_lea.hbm %s445_s3, 512 }
  0x14   :  { %s34_s8 = sshll.u32 %s355_s7, 4  ;;  %p303_p8 = scmp.ne.s32.totalorder %s445_s3, %s302_s11  ;;  %s35_s8 = int_to_ptr.vmem [resolvable:$true] %s34_s8 }
  0x15   :  { %p306_p9 = scmp.lt.u32.totalorder %s302_s11, %s445_s3 }
  0x17   :  { %p308_p10 = pnand %p306_p9, %p303_p8 }
  0x19   :  { %311 = shalt.err (!%p308_p10)
}
  0x1a   :  { %s312_s16 = scalar_lea.vmem %s35_s8, 512  ;;  %p317_p12 = scmp.lt.s32.totalorder %s35_s8, %s35_s8 }
  0x1b   :  { %p313_p11 = scmp.ne.s32.totalorder %s35_s8, %s312_s16  ;;  %p318_p13 = scmp.lt.s32.totalorder %s312_s16, %s312_s16 }
  0x1d   :  { %p319_p0 = por %p318_p13, %p317_p12 }
  0x1f   :  { %p320_p1 = pnand %p319_p0, %p313_p11 }
  0x21   :  { %323 = shalt.err (!%p320_p1)
}
  0x22   :  { %40 = dma.hbm_to_vmem [thread:$0]  %s445_s3, 512, %s35_s8, [#allocation7], %s353_s28, %s353_s28, %s354_s29  }
  0x23   :  { %346 = dma.done.wait [#allocation4], 256  }
  0x24   :  { %347 = vsyncadd [#allocation4], 4294967040 }
  0x25   :  { %348 = dma.done.wait [#allocation7], 512  }
  0x26   :  { %349 = vsyncadd [#allocation7], 4294966784  ;;  %v58_v0 = vlaneseq  ;;  %v356_v1 = vmov 0   ;;  %v357_v2 = vmov 1966171168   ;;  %vm53_vm2 = vcmask 254976  }
  0x27   :  { %278 = vset.pattern.permute.xlu0 %v356_v1  ;;  %v72_v3 = vunpack.c.l.s4 %v357_v2  ;;  %279 = vset.pattern.permute.xlu1 %v356_v1  ;;  %v243_v8 = vld.sshfl [vmem:[%s443_s1] sm:$0x11 pattern:$0x75316420]  ;;  %v358_v17 = vmov 0.0   ;;  %v142_v18 = vld [vmem:[#allocation6] sm:$0xff] }
  0x28   :  { %v59_v4 = vshrl.u32 %v58_v0, 7  ;;  %v135_v9 = vld [vmem:[%s444_s2] sm:$0x3]  ;;  %v70_v11 = vcombine.high %v243_v8, %v243_v8  ;;  %54 = vst.msk [vmem:[#allocation2] sm:$0x3] %vm53_vm2, %v358_v17  ;;  %v144_v20 = vld [vmem:[#allocation6 + $0x10] sm:$0xff] }
  0x29   :  { %v73_v5 = vunpack.c.0.s8 %v72_v3  ;;  %138 = vperm.xlu1 %279, %v135_v9   ;;  %v143_v19 = vld [vmem:[#allocation6 + $0x8] sm:$0xff]  ;;  %v359_v21 = vmov 0.0|0.0   ;;  %v145_v23 = vld [vmem:[#allocation6 + $0x18] sm:$0xff]  ;;  %vm360_vm3 = vmmov 0   ;;  %v55_v25 = vld [vmem:[#allocation3] sm:$0xff]  ;;  %vm108_vm4 = vcmask 261120  }
  0x2a   :  { %v87_v7 = vsub.s32 0, %v59_v4  ;;  %262 = vmatprep.subr.bf16.mxu0 %v359_v21  ;;  %v263_v22 = vpack.c.bf16 %v143_v19, %v142_v18  ;;  %v266_v24 = vpack.c.bf16 %v145_v23, %v144_v20  ;;  %259 = vmatprep.mubr.msk.f32.mxu0 %vm360_vm3, %v358_v17  ;;  %v56_v29 = vld [vmem:[#allocation3 + $0x8] sm:$0xff]  ;;  %vm125_vm7 = vcmask 1041409   ;;  %v244_v51 = vld [vmem:[%s446_s4] ss:$0 sm:$0xff]  ;;  %s361_s21 = smov [#allocation8]  }
  0x2b   :  { %v76_v6 = vsub.s32 %v73_v5, %v59_v4  ;;  %s233_s22 = sshll.u32 %s361_s21, 4  ;;  %s234_s22 = int_to_ptr.vmem [resolvable:$true] %s233_s22 }
  0x2c   :  { %264 = vmatpush3.bf16.msra.mxu0 %v263_v22  ;;  %s324_s23 = scalar_lea.vmem %s234_s22, 32  ;;  %p329_p3 = scmp.lt.s32.totalorder %s234_s22, %s234_s22 }
  0x2d   :  { %v77_v10 = vrot.slane %v243_v8, %v76_v6  ;;  %v84_v13 = vrot.slane %v70_v11, %v76_v6  ;;  %265 = vmatprep.subr.bf16.mxu0 %v359_v21  ;;  %p325_p2 = scmp.ne.s32.totalorder %s234_s22, %s324_s23  ;;  %p330_p4 = scmp.lt.s32.totalorder %s324_s23, %s324_s23 }
  0x2f   :  { %v88_v12 = vrot.slane %v77_v10, %v87_v7  ;;  %v92_v14 = vrot.slane %v84_v13, %v87_v7  ;;  %v95_v45 = vld [vmem:[#allocation2] sm:$0x3]  ;;  %p331_p5 = por %p330_p4, %p329_p3 }
  0x30   :  { %267 = vmatpush3.bf16.msra.mxu0 %v266_v24 }
  0x31   :  { %vm93_vm0 = vcmp.lt.s32.totalorder %v59_v4, %v88_v12  ;;  %vm94_vm1 = vcmp.lt.s32.totalorder %v59_v4, %v92_v14  ;;  %p332_p6 = pnand %p331_p5, %p325_p2 }
  0x32   :  { %v96_v15 = vsel %vm93_vm0, 1, %v356_v1  ;;  %v97_v16 = vsel %vm94_vm1, 1, %v356_v1 }
  0x33   :  { %99 = vperm.xlu0 %278, %v96_v15  }
  0x37   :  { %102 = vperm.xlu0 %278, %v97_v16  }
  0xa8   :  { %v139_v48 = vpop.permute.xlu1 %138 }
  0xb2   :  { %v100_v26 = vpop.permute.xlu0 %99 }
  0xb3   :  { %vm104_vm5 = vcmp.eq.s32.totalorder %v100_v26, 1 }
  0xb4   :  { %v106_v27 = vsel %vm104_vm5, %v55_v25, 0.0 }
  0xb5   :  { %v109_v28 = vsel %vm108_vm4, %v106_v27, 0.0 }
  0xb6   :  { %v110_v30 = vrot.slane %v109_v28, 4  ;;  %v103_v31 = vpop.permute.xlu0 %102 }
  0xb7   :  { %vm105_vm6 = vcmp.eq.s32.totalorder %v103_v31, 1 }
  0xb8   :  { %v111_v32 = vadd.f32 %v110_v30, %v109_v28  ;;  %v107_v33 = vsel %vm105_vm6, %v56_v29, 0.0 }
  0xb9   :  { %v116_v34 = vsel %vm108_vm4, %v107_v33, 0.0 }
  0xba   :  { %v112_v35 = vrot.slane %v111_v32, 2  ;;  %v117_v36 = vrot.slane %v116_v34, 4 }
  0xbc   :  { %v113_v37 = vadd.f32 %v112_v35, %v111_v32  ;;  %v118_v38 = vadd.f32 %v117_v36, %v116_v34 }
  0xbe   :  { %v119_v39 = vrot.slane %v118_v38, 2  ;;  %v114_v40 = vrot.slane %v113_v37, 1 }
  0xc0   :  { %v120_v41 = vadd.f32 %v119_v39, %v118_v38  ;;  %v115_v43 = vadd.f32 %v114_v40, %v113_v37 }
  0xc2   :  { %v121_v42 = vrot.slane %v120_v41, 1 }
  0xc4   :  { %v122_v44 = vadd.f32 %v121_v42, %v120_v41 }
  0xc6   :  { %v126_v46 = vsel %vm125_vm7, %v122_v44, %v115_v43 }
  0xc7   :  { %v128_v47 = vadd.f32 %v126_v46, %v95_v45 }
  0xc9   :  { %130 = vst.msk [vmem:[#allocation2] sm:$0x3] %vm53_vm2, %v128_v47 }
  0xd0   :  { %v134_v49 = vld [vmem:[#allocation2] sm:$0x3] }
  0xd1   :  { %v141_v50 = vmul.f32 %v139_v48, %v134_v49 }
  0xd3   :  { %260 = vmatmul.mubr.msk.f32.vlgmr.msra.gmra.mrb[0].mxu0 %vm108_vm4, %v141_v50 }
 0x1a6   :  { %v222_v52 = vpop.f32.mrb[0].mxu0 }
 0x1a7   :  { %v223_v53 = vadd.f32 %v244_v51, %v222_v52  ;;  %v261_v54 = vpop.f32.mrb[1].mxu0 }
 0x1a9   :  { %226 = vst [vmem:[#allocation8] sm:$0x3] %v223_v53 }
 0x1aa   :  { %335 = shalt.err (!%p332_p6)
}
 0x1ab   :  { %s336_s26 = scalar_lea.hbm %s447_s5, 32 }
 0x1ac   :  { %p337_p7 = scmp.ne.s32.totalorder %s447_s5, %s336_s26  ;;  %p340_p8 = scmp.lt.u32.totalorder %s336_s26, %s447_s5 }
 0x1ae   :  { %p342_p9 = pnand %p340_p8, %p337_p7 }
 0x1b0   :  { %345 = shalt.err (!%p342_p9)
}
 0x1b1   :  { %236 = dma.vmem_to_hbm [thread:$0]  %s234_s22, 32, %s447_s5, [#allocation5]  }
 0x1b2   :  { %350 = dma.done.wait [#allocation5], 32  }
 0x1b3   :  { %351 = vsyncadd [#allocation5], 4294967264 }
 0x1b4   :  { %240 = vsyncpa [#allocation4], 1 }
 0x1b5   :  { %241 = vsyncpa [#allocation7], 1 }
 0x1b6   :  { %242 = vsyncpa [#allocation5], 1 }

</bundles_post_ra>
